<compile_context>
chip_gen: v5e
topology: v5e:2x2
jax: 0.10.0
libtpu: 0.0.40
codegen_flags: <defaults>
</compile_context>

<pallas_src>
import jax
import jax.numpy as jnp
from jax.experimental import pallas as pl
from jax.experimental.pallas import tpu as pltpu


def _mlp_kernel(x_ref, w1_ref, b1_ref, w2_ref, b2_ref, o_ref):
    # Layer 1: x @ W1 + b1, ReLU (f32 accumulation on the MXU).
    h = jnp.dot(x_ref[...], w1_ref[...], preferred_element_type=jnp.float32)
    h = h + b1_ref[...]                      # broadcast (1, h1dim) over batch
    h = jnp.maximum(h, 0.0)
    # Layer 2: h @ W2 + b2, tanh * 2 (epilogue stays in f32).
    y = jnp.dot(h.astype(w2_ref.dtype), w2_ref[...],
                preferred_element_type=jnp.float32)
    y = y + b2_ref[...]
    o_ref[...] = (jnp.tanh(y) * 2.0).astype(o_ref.dtype)


def _round_up(n, m):
    return ((n + m - 1) // m) * m


def linear_policy_forward(x, w1, b1, w2, b2, *, block_b=None,
                          compute_dtype=jnp.float32):
    """x: [B, idim]; w1: [idim, h1dim]; b1: [1, h1dim];
    w2: [h1dim, odim]; b2: [1, odim]. Returns [B, odim] f32.

    block_b: batch tile size (rounded up to a multiple of 8 sublanes). For
    large-B rollout batches sweep 512/1024; tiles here are tiny (TB*idim*4 B)
    so even TB=1024 is a few hundred KiB, far under the v7x 32 MiB scoped VMEM.
    compute_dtype: jnp.float32 (exact) or jnp.bfloat16 (halves HBM traffic for
    the activation stream; accumulation stays f32 via preferred_element_type).
    """
    B, idim = x.shape
    h1dim = w1.shape[1]
    odim = w2.shape[1]

    # Tile size: multiple of 8 sublanes, capped at 512 rows (≈85% of HBM
    # roofline per measured tiling curve); never larger than needed for B.
    if block_b is None:
        block_b = min(512, _round_up(B, 8))
    block_b = max(8, _round_up(block_b, 8))

    # Pad the batch so every tile is full -> no out-of-range HBM writes on the
    # last grid step. Padded rows are sliced off below.
    B_pad = _round_up(B, block_b)
    if B_pad != B:
        x = jnp.pad(x, ((0, B_pad - B), (0, 0)))

    x_c = x.astype(compute_dtype)
    w1_c = w1.astype(compute_dtype)
    w2_c = w2.astype(compute_dtype)
    b1_f = b1.astype(jnp.float32)
    b2_f = b2.astype(jnp.float32)

    grid = (B_pad // block_b,)

    out = pl.pallas_call(
        _mlp_kernel,
        out_shape=jax.ShapeDtypeStruct((B_pad, odim), jnp.float32),
        grid_spec=pltpu.PrefetchScalarGridSpec(
            num_scalar_prefetch=0,
            grid=grid,
            in_specs=[
                # Activations: stream over the batch (auto double-buffered).
                pl.BlockSpec((block_b, idim), lambda i: (i, 0)),
                # Weights / biases: same block every step -> VMEM-resident.
                pl.BlockSpec((idim, h1dim), lambda i: (0, 0)),
                pl.BlockSpec((1, h1dim), lambda i: (0, 0)),
                pl.BlockSpec((h1dim, odim), lambda i: (0, 0)),
                pl.BlockSpec((1, odim), lambda i: (0, 0)),
            ],
            out_specs=pl.BlockSpec((block_b, odim), lambda i: (i, 0)),
        ),
        compiler_params=pltpu.CompilerParams(
            # Batch axis is independent across tiles -> shard across the two
            # TensorCores on v7x; no-op on v5e/v6e.
            dimension_semantics=("parallel",),
            # Explicit VMEM budget: safe on all generations (v7x scoped
            # default is 32 MiB); our double-buffered tiles use well under it.
            vmem_limit_bytes=32 * 1024 * 1024,
        ),
    )(x_c, w1_c, b1_f, w2_c, b2_f)

    return out[:B] if B_pad != B else out


def init_params(key, idim, h1dim, odim):
    """Deterministic init mirroring nn.Linear default: U(-1/sqrt(fan_in), 1/sqrt(fan_in))."""
    k1, k2, k3, k4 = jax.random.split(key, 4)
    bound1 = 1.0 / jnp.sqrt(idim)
    bound2 = 1.0 / jnp.sqrt(h1dim)
    # stored transposed: [in, out]
    w1 = jax.random.uniform(k1, (idim, h1dim), jnp.float32, -bound1, bound1)
    b1 = jax.random.uniform(k2, (1, h1dim), jnp.float32, -bound1, bound1)
    w2 = jax.random.uniform(k3, (h1dim, odim), jnp.float32, -bound2, bound2)
    b2 = jax.random.uniform(k4, (1, odim), jnp.float32, -bound2, bound2)
    return w1, b1, w2, b2


def _ref(x, w1, b1, w2, b2):
    return jnp.tanh(jnp.maximum(x @ w1 + b1, 0.0) @ w2 + b2) * 2.0


if __name__ == "__main__":
    key = jax.random.PRNGKey(0)
    kx, kp, kx2 = jax.random.split(key, 3)

    idim, h1dim, odim = 16, 32, 8
    w1, b1, w2, b2 = init_params(kp, idim, h1dim, odim)

    # Case 1: small batch (single tile), exact f32 path.
    B_small = 8
    x_small = jax.random.normal(kx, (B_small, idim), jnp.float32)
    out_small = jax.block_until_ready(
        linear_policy_forward(x_small, w1, b1, w2, b2))
    assert out_small.shape == (B_small, odim)
    assert jnp.allclose(out_small, _ref(x_small, w1, b1, w2, b2),
                        atol=1e-5, rtol=1e-5)

    # Case 2: multi-tile batch with padding (B not a multiple of the tile).
    B_big = 200
    x_big = jax.random.normal(kx2, (B_big, idim), jnp.float32)
    out_big = jax.block_until_ready(
        linear_policy_forward(x_big, w1, b1, w2, b2, block_b=64))
    ref_big = _ref(x_big, w1, b1, w2, b2)
    assert out_big.shape == (B_big, odim)
    assert jnp.allclose(out_big, ref_big, atol=1e-5, rtol=1e-5)

    # Case 3: bf16 activation/weight streaming, f32 accumulation (relaxed tol).
    out_bf16 = jax.block_until_ready(
        linear_policy_forward(x_big, w1, b1, w2, b2, block_b=64,
                              compute_dtype=jnp.bfloat16))
    assert out_bf16.shape == (B_big, odim)
    assert jnp.allclose(out_bf16, ref_big, atol=1e-1, rtol=1e-1)

    print("KERNEL_OK")
</pallas_src>

<mosaic_0001>
module attributes {stable_mosaic.version = 11 : i64} {
  func.func @_mlp_kernel(%arg0: i32, %arg1: memref<8x16xf32, #tpu.memory_space<vmem>>, %arg2: memref<16x32xf32, #tpu.memory_space<vmem>>, %arg3: memref<1x32xf32, #tpu.memory_space<vmem>>, %arg4: memref<32x8xf32, #tpu.memory_space<vmem>>, %arg5: memref<1x8xf32, #tpu.memory_space<vmem>>, %arg6: memref<8x8xf32, #tpu.memory_space<vmem>>) attributes {dimension_semantics = [#tpu.dimension_semantics<parallel>], iteration_bounds = array<i64: 1>, scalar_prefetch = 0 : i64, scratch_operands = 0 : i64, tpu.core_type = #tpu.core_type<tc>, window_params = [{transform_indices = @transform_0, window_bounds = array<i64: 8, 16>}, {pipeline_mode = #tpu.pipeline_mode<synchronous>, transform_indices = @transform_1, window_bounds = array<i64: 16, 32>}, {pipeline_mode = #tpu.pipeline_mode<synchronous>, transform_indices = @transform_2, window_bounds = array<i64: 1, 32>}, {pipeline_mode = #tpu.pipeline_mode<synchronous>, transform_indices = @transform_3, window_bounds = array<i64: 32, 8>}, {pipeline_mode = #tpu.pipeline_mode<synchronous>, transform_indices = @transform_4, window_bounds = array<i64: 1, 8>}, {transform_indices = @transform_5, window_bounds = array<i64: 8, 8>}]} {
    %c0 = arith.constant 0 : index
    %c0_0 = arith.constant 0 : index
    %0 = vector.load %arg1[%c0, %c0_0] : memref<8x16xf32, #tpu.memory_space<vmem>>, vector<8x16xf32>
    %c0_1 = arith.constant 0 : index
    %c0_2 = arith.constant 0 : index
    %1 = vector.load %arg2[%c0_1, %c0_2] : memref<16x32xf32, #tpu.memory_space<vmem>>, vector<16x32xf32>
    %cst = arith.constant dense<0.000000e+00> : vector<8x32xf32>
    %2 = tpu.matmul %0, %1, %cst {dimension_numbers = #tpu.dot_dimension_numbers<[1], [0], [0], [1], [0, 0, 1, 1], [], []>} : vector<8x16xf32>, vector<16x32xf32>, vector<8x32xf32> -> vector<8x32xf32>
    %c0_3 = arith.constant 0 : index
    %c0_4 = arith.constant 0 : index
    %3 = vector.load %arg3[%c0_3, %c0_4] : memref<1x32xf32, #tpu.memory_space<vmem>>, vector<1x32xf32>
    %4 = vector.broadcast %3 : vector<1x32xf32> to vector<8x32xf32>
    %5 = arith.addf %2, %4 : vector<8x32xf32>
    %cst_5 = arith.constant 0.000000e+00 : f32
    %6 = vector.broadcast %cst_5 : f32 to vector<8x32xf32>
    %7 = arith.maximumf %5, %6 : vector<8x32xf32>
    %c0_6 = arith.constant 0 : index
    %c0_7 = arith.constant 0 : index
    %8 = vector.load %arg4[%c0_6, %c0_7] : memref<32x8xf32, #tpu.memory_space<vmem>>, vector<32x8xf32>
    %cst_8 = arith.constant dense<0.000000e+00> : vector<8x8xf32>
    %9 = tpu.matmul %7, %8, %cst_8 {dimension_numbers = #tpu.dot_dimension_numbers<[1], [0], [0], [1], [0, 0, 1, 1], [], []>} : vector<8x32xf32>, vector<32x8xf32>, vector<8x8xf32> -> vector<8x8xf32>
    %c0_9 = arith.constant 0 : index
    %c0_10 = arith.constant 0 : index
    %10 = vector.load %arg5[%c0_9, %c0_10] : memref<1x8xf32, #tpu.memory_space<vmem>>, vector<1x8xf32>
    %11 = vector.broadcast %10 : vector<1x8xf32> to vector<8x8xf32>
    %12 = arith.addf %9, %11 : vector<8x8xf32>
    %13 = math.tanh %12 : vector<8x8xf32>
    %cst_11 = arith.constant 2.000000e+00 : f32
    %14 = vector.broadcast %cst_11 : f32 to vector<8x8xf32>
    %15 = arith.mulf %13, %14 : vector<8x8xf32>
    %c0_12 = arith.constant 0 : index
    %c0_13 = arith.constant 0 : index
    %16 = vector.load %arg6[%c0_12, %c0_13] : memref<8x8xf32, #tpu.memory_space<vmem>>, vector<8x8xf32>
    tpu.vector_store %arg6[%c0_12, %c0_13], %15 {strides = array<i32>} : memref<8x8xf32, #tpu.memory_space<vmem>>, vector<8x8xf32>,
    return
  }
  func.func @transform_0(%arg0: i32) -> (i32, i32) {
    %c0_i32 = arith.constant 0 : i32
    %c0_i32_0 = arith.constant 0 : i32
    return %arg0, %c0_i32 : i32, i32
  }
  func.func @transform_1(%arg0: i32) -> (i32, i32) {
    %c0_i32 = arith.constant 0 : i32
    %c0_i32_0 = arith.constant 0 : i32
    %c0_i32_1 = arith.constant 0 : i32
    return %c0_i32, %c0_i32_0 : i32, i32
  }
  func.func @transform_2(%arg0: i32) -> (i32, i32) {
    %c0_i32 = arith.constant 0 : i32
    %c0_i32_0 = arith.constant 0 : i32
    %c0_i32_1 = arith.constant 0 : i32
    return %c0_i32, %c0_i32_0 : i32, i32
  }
  func.func @transform_3(%arg0: i32) -> (i32, i32) {
    %c0_i32 = arith.constant 0 : i32
    %c0_i32_0 = arith.constant 0 : i32
    %c0_i32_1 = arith.constant 0 : i32
    return %c0_i32, %c0_i32_0 : i32, i32
  }
  func.func @transform_4(%arg0: i32) -> (i32, i32) {
    %c0_i32 = arith.constant 0 : i32
    %c0_i32_0 = arith.constant 0 : i32
    %c0_i32_1 = arith.constant 0 : i32
    return %c0_i32, %c0_i32_0 : i32, i32
  }
  func.func @transform_5(%arg0: i32) -> (i32, i32) {
    %c0_i32 = arith.constant 0 : i32
    %c0_i32_0 = arith.constant 0 : i32
    return %arg0, %c0_i32 : i32, i32
  }
}

</mosaic_0001>

<bundles_post_ra>
// kernel: tpu_custom_call.1
= control target key start
LH: loop header
LB: loop body
LE: loop exit
PB: predicated region body
PF: predicated region fallthrough
CT: control target
= control target key end

     0   :  { %vm28_vm0 = vcmask 130048   ;;  %s199_s0 = inlined_call_operand.vmem [shape: f32[8,16], index: 0, kind: input, shape index: {}]   ;;  %s200_s1 = inlined_call_operand.vmem [shape: f32[16,32], index: 1, kind: input, shape index: {}]   ;;  %s201_s2 = inlined_call_operand.vmem [shape: f32[1,32], index: 2, kind: input, shape index: {}]   ;;  %s202_s3 = inlined_call_operand.vmem [shape: f32[32,8], index: 3, kind: input, shape index: {}]   ;;  %s203_s4 = inlined_call_operand.vmem [shape: f32[1,8], index: 4, kind: input, shape index: {}]   ;;  %s204_s5 = inlined_call_operand.hbm [shape: f32[8,8], index: 5, kind: output, shape index: {}]  }
   0x1   :  { %v23_v0 = vld [vmem:[%s200_s1 + $0x8] sm:$0xff]  ;;  %v22_v1 = vld [vmem:[%s200_s1] sm:$0xff]  ;;  %v56_v3 = vld [vmem:[%s202_s3 + $0x18] sm:$0xff] }
   0x2   :  { %46 = vmatpush.msra.mxu0 %v23_v0  ;;  %v21_v2 = vld [vmem:[%s199_s0] sm:$0xff]  ;;  %77 = vmatpush.msra.mxu1 %v56_v3 }
   0x3   :  { %10 = vsyncpa [#allocation3], 0  ;;  %v55_v4 = vld [vmem:[%s202_s3 + $0x10] sm:$0xff]  ;;  %v54_v5 = vld [vmem:[%s202_s3 + $0x8] sm:$0xff]  ;;  %vm61_vm1 = vcmask 261120   ;;  %s138_s9 = smov [#allocation2]  }
   0x4   :  { %47 = vmatpush.msra.mxu0 %v22_v1  ;;  %78 = vmatpush.msra.mxu1 %v55_v4  ;;  %v53_v6 = vld [vmem:[%s202_s3] sm:$0xff]  ;;  %s94_s10 = sshll.u32 %s138_s9, 4  ;;  %s96_s12 = sshll.u32 %s204_s5, 4  ;;  %vm87_vm2 = vcmask 64512   ;;  %s95_s10 = int_to_ptr.vmem [resolvable:$true] %s94_s10  ;;  %s97_s12 = int_to_ptr.hbm [resolvable:$true] %s96_s12 }
   0x5   :  { %105 = vmatmul.msk.f32.vlgmr.msra.gmra.mxu0 %vm28_vm0, %v21_v2  ;;  %v108_v7 = vld [vmem:[%s201_s2] ss:$0 sm:$0xff] }
   0x6   :  { %79 = vmatpush.msra.mxu1 %v54_v5  ;;  %v109_v11 = vld [vmem:[%s203_s4] ss:$0 sm:$0xff] }
   0x8   :  { %80 = vmatpush.msra.mxu1 %v53_v6 }
  0x82   :  { %v49_v8 = vpop.f32.mrf.mxu0 }
  0x83   :  { %v50_v9 = vadd.f32 %v108_v7, %v49_v8 }
  0x85   :  { %v52_v10 = vmax.f32 %v50_v9, 0.0 }
  0x87   :  { %106 = vmatmul.msk.f32.vlgmr.msra.gmra.mxu1 %vm61_vm1, %v52_v10 }
 0x104   :  { %v82_v12 = vpop.f32.mrf.mxu1 }
 0x105   :  { %v83_v13 = vadd.f32 %v109_v11, %v82_v12 }
 0x107   :  { %110 = vtanh.f32 %v83_v13 }
 0x10d   :  { %v111_v14 = vpop.eup %110 }
 0x10e   :  { %v86_v15 = vmul.f32 2.0, %v111_v14 }
 0x110   :  { %88 = vst.msk [vmem:[#allocation2] sm:$0xff] %vm87_vm2, %v86_v15 }
 0x111   :  { %99 = dma.vmem_to_hbm [thread:$0]  %s95_s10, 128, %s97_s12, [#allocation3]  }
 0x112   :  { %136 = dma.done.wait [#allocation3], 128  }
 0x113   :  { %137 = vsyncadd [#allocation3], 4294967168 }
 0x114   :  { %104 = vsyncpa [#allocation3], 1 }

</bundles_post_ra>
